<compile_context>
chip_gen: v7x
topology: tpu7x:2x2x1
jax: 0.10.0
libtpu: 0.0.40
codegen_flags: <defaults>
</compile_context>

<pallas_src>
import jax
import jax.numpy as jnp
from jax.experimental import pallas as pl
from jax.experimental.pallas import tpu as pltpu

EPS = 1e-8
SCALE_INIT = 1.0
_LANES = 128
_SUB_ALIGN = 16          # sublane multiple safe for both f32 (8) and bf16 (16)


def _round_up(x, m):
    return (x + m - 1) // m * m


def coors_norm_kernel(scale_ref, x_ref, o_ref):
    """x_ref / o_ref: (D, BLK_SUB, 128) lane-dense tiles.  scale_ref: (1,) SMEM."""
    D = x_ref.shape[0]
    # Dense (BLK_SUB, 128) component planes; unrolled sum of squares -> pure VPU.
    planes = [x_ref[d].astype(jnp.float32) for d in range(D)]
    ss = planes[0] * planes[0]
    for d in range(1, D):
        ss = ss + planes[d] * planes[d]
    # x / max(||x||, eps) * scale  ==  x * (scale * rsqrt(max(ss, eps^2)))
    inv = jax.lax.rsqrt(jnp.maximum(ss, EPS * EPS)) * scale_ref[0]   # EUP rsqrt
    for d in range(D):
        o_ref[d] = (planes[d] * inv).astype(o_ref.dtype)


def coors_norm(coors, scale, *, block_sublanes=1024):
    """coors: (..., D) array; scale: (1,) parameter.  Matches CoorsNorm.forward."""
    orig_shape = coors.shape
    D = orig_shape[-1]
    x = coors.reshape(-1, D)
    R = x.shape[0]

    # Lane-dense staging layout: (D, R) split into 128-lane rows -> (D, S, 128).
    sub = pl.cdiv(R, _LANES)                     # 128-lane rows needed
    nblk = pl.cdiv(sub, block_sublanes)          # grid length (even sized blocks)
    blk = _round_up(pl.cdiv(sub, nblk), _SUB_ALIGN)
    sub_p = nblk * blk
    Rp = sub_p * _LANES

    # One relayout pass; only the staging buffer's ragged tail is padded
    # (bounded by < nblk*_SUB_ALIGN*128 + 128 elements, not a full-array copy).
    xt = jnp.swapaxes(x, 0, 1)                   # (D, R)
    if Rp != R:
        # Zero rows -> ss=0 -> clamped to eps^2 -> output 0; sliced off below.
        xt = jnp.pad(xt, ((0, 0), (0, Rp - R)))
    xt = xt.reshape(D, sub_p, _LANES)

    out = pl.pallas_call(
        coors_norm_kernel,
        out_shape=jax.ShapeDtypeStruct((D, sub_p, _LANES), coors.dtype),
        grid_spec=pltpu.PrefetchScalarGridSpec(
            num_scalar_prefetch=0,
            grid=(nblk,),
            in_specs=[
                pl.BlockSpec(memory_space=pltpu.SMEM),                 # scale (1,)
                pl.BlockSpec((D, blk, _LANES), lambda i: (0, i, 0)),   # coord planes
            ],
            out_specs=pl.BlockSpec((D, blk, _LANES), lambda i: (0, i, 0)),
        ),
        compiler_params=pltpu.CompilerParams(
            dimension_semantics=("parallel",)),
    )(scale, xt)

    out = out.reshape(D, Rp)[:, :R]
    return jnp.swapaxes(out, 0, 1).reshape(orig_shape)


if __name__ == "__main__":
    key = jax.random.PRNGKey(0)

    # Small shape matching the module's usage: (batch, num_points, 3D coords).
    B, N, D = 2, 8, 3
    coors = jax.random.normal(key, (B, N, D), dtype=jnp.float32)

    # Deterministic parameter init, matching nn.Parameter(torch.zeros(1).fill_(1.0))
    scale = jnp.full((1,), SCALE_INIT, dtype=jnp.float32)

    out = jax.block_until_ready(coors_norm(coors, scale))

    # Pure-JAX reference (original formula: sqrt -> clamp -> divide -> scale).
    ref_norm = jnp.linalg.norm(coors, axis=-1, keepdims=True)
    ref = coors / jnp.maximum(ref_norm, EPS) * scale[0]
    assert out.shape == coors.shape
    assert jnp.allclose(out, ref, atol=1e-5, rtol=1e-5)

    # Second check: forces a multi-block grid and a ragged tail (R=4000 rows,
    # block_sublanes=16 -> grid=(2,), padded to 4096 rows).
    coors2 = jax.random.normal(jax.random.PRNGKey(1), (4, 1000, 3), dtype=jnp.float32)
    out2 = jax.block_until_ready(coors_norm(coors2, scale, block_sublanes=16))
    ref2_norm = jnp.linalg.norm(coors2, axis=-1, keepdims=True)
    ref2 = coors2 / jnp.maximum(ref2_norm, EPS) * scale[0]
    assert out2.shape == coors2.shape
    assert jnp.allclose(out2, ref2, atol=1e-5, rtol=1e-5)

    print("KERNEL_OK")
</pallas_src>

<mosaic_0001>
module attributes {stable_mosaic.version = 11 : i64} {
  func.func @coors_norm_kernel(%arg0: i32, %arg1: memref<1xf32, #tpu.memory_space<smem>>, %arg2: memref<3x16x128xf32, #tpu.memory_space<vmem>>, %arg3: memref<3x16x128xf32, #tpu.memory_space<vmem>>) attributes {dimension_semantics = [#tpu.dimension_semantics<parallel>], iteration_bounds = array<i64: 1>, scalar_prefetch = 0 : i64, scratch_operands = 0 : i64, tpu.core_type = #tpu.core_type<tc>, window_params = [{transform_indices = @transform_0, window_bounds = array<i64: 1>}, {transform_indices = @transform_1, window_bounds = array<i64: 3, 16, 128>}, {transform_indices = @transform_2, window_bounds = array<i64: 3, 16, 128>}]} {
    %c0 = arith.constant 0 : index
    %c0_0 = arith.constant 0 : index
    %c0_1 = arith.constant 0 : index
    %0 = vector.load %arg2[%c0, %c0_0, %c0_1] : memref<3x16x128xf32, #tpu.memory_space<vmem>>, vector<1x16x128xf32>
    %1 = vector.shape_cast %0 : vector<1x16x128xf32> to vector<16x128xf32>
    %c1 = arith.constant 1 : index
    %c0_2 = arith.constant 0 : index
    %c0_3 = arith.constant 0 : index
    %2 = vector.load %arg2[%c1, %c0_2, %c0_3] : memref<3x16x128xf32, #tpu.memory_space<vmem>>, vector<1x16x128xf32>
    %3 = vector.shape_cast %2 : vector<1x16x128xf32> to vector<16x128xf32>
    %c2 = arith.constant 2 : index
    %c0_4 = arith.constant 0 : index
    %c0_5 = arith.constant 0 : index
    %4 = vector.load %arg2[%c2, %c0_4, %c0_5] : memref<3x16x128xf32, #tpu.memory_space<vmem>>, vector<1x16x128xf32>
    %5 = vector.shape_cast %4 : vector<1x16x128xf32> to vector<16x128xf32>
    %6 = arith.mulf %1, %1 : vector<16x128xf32>
    %7 = arith.mulf %3, %3 : vector<16x128xf32>
    %8 = arith.addf %6, %7 : vector<16x128xf32>
    %9 = arith.mulf %5, %5 : vector<16x128xf32>
    %10 = arith.addf %8, %9 : vector<16x128xf32>
    %cst = arith.constant 1.000000e-16 : f32
    %11 = vector.broadcast %cst : f32 to vector<16x128xf32>
    %12 = arith.maximumf %10, %11 : vector<16x128xf32>
    %13 = math.rsqrt %12 : vector<16x128xf32>
    %c0_6 = arith.constant 0 : index
    %14 = memref.load %arg1[%c0_6] : memref<1xf32, #tpu.memory_space<smem>>
    %15 = vector.broadcast %14 : f32 to vector<16x128xf32>
    %16 = arith.mulf %13, %15 : vector<16x128xf32>
    %17 = arith.mulf %1, %16 : vector<16x128xf32>
    %c0_7 = arith.constant 0 : index
    %c0_8 = arith.constant 0 : index
    %c0_9 = arith.constant 0 : index
    %18 = vector.load %arg3[%c0_7, %c0_8, %c0_9] : memref<3x16x128xf32, #tpu.memory_space<vmem>>, vector<1x16x128xf32>
    %19 = vector.shape_cast %18 : vector<1x16x128xf32> to vector<16x128xf32>
    %20 = vector.shape_cast %17 : vector<16x128xf32> to vector<1x16x128xf32>
    tpu.vector_store %arg3[%c0_7, %c0_8, %c0_9], %20 {strides = array<i32>} : memref<3x16x128xf32, #tpu.memory_space<vmem>>, vector<1x16x128xf32>,
    %21 = arith.mulf %3, %16 : vector<16x128xf32>
    %c1_10 = arith.constant 1 : index
    %c0_11 = arith.constant 0 : index
    %c0_12 = arith.constant 0 : index
    %22 = vector.load %arg3[%c1_10, %c0_11, %c0_12] : memref<3x16x128xf32, #tpu.memory_space<vmem>>, vector<1x16x128xf32>
    %23 = vector.shape_cast %22 : vector<1x16x128xf32> to vector<16x128xf32>
    %24 = vector.shape_cast %21 : vector<16x128xf32> to vector<1x16x128xf32>
    tpu.vector_store %arg3[%c1_10, %c0_11, %c0_12], %24 {strides = array<i32>} : memref<3x16x128xf32, #tpu.memory_space<vmem>>, vector<1x16x128xf32>,
    %25 = arith.mulf %5, %16 : vector<16x128xf32>
    %c2_13 = arith.constant 2 : index
    %c0_14 = arith.constant 0 : index
    %c0_15 = arith.constant 0 : index
    %26 = vector.load %arg3[%c2_13, %c0_14, %c0_15] : memref<3x16x128xf32, #tpu.memory_space<vmem>>, vector<1x16x128xf32>
    %27 = vector.shape_cast %26 : vector<1x16x128xf32> to vector<16x128xf32>
    %28 = vector.shape_cast %25 : vector<16x128xf32> to vector<1x16x128xf32>
    tpu.vector_store %arg3[%c2_13, %c0_14, %c0_15], %28 {strides = array<i32>} : memref<3x16x128xf32, #tpu.memory_space<vmem>>, vector<1x16x128xf32>,
    return
  }
  func.func @transform_0(%arg0: i32) -> i32 {
    %c0_i32 = arith.constant 0 : i32
    %c0_i32_0 = arith.constant 0 : i32
    return %c0_i32 : i32
  }
  func.func @transform_1(%arg0: i32) -> (i32, i32, i32) {
    %c0_i32 = arith.constant 0 : i32
    %c0_i32_0 = arith.constant 0 : i32
    %c0_i32_1 = arith.constant 0 : i32
    return %c0_i32, %arg0, %c0_i32_0 : i32, i32, i32
  }
  func.func @transform_2(%arg0: i32) -> (i32, i32, i32) {
    %c0_i32 = arith.constant 0 : i32
    %c0_i32_0 = arith.constant 0 : i32
    %c0_i32_1 = arith.constant 0 : i32
    return %c0_i32, %arg0, %c0_i32_0 : i32, i32, i32
  }
}

</mosaic_0001>

<bundles_post_ra>
// kernel: tpu_custom_call.1
= control target key start
LH: loop header
LB: loop body
LE: loop exit
PB: predicated region body
PF: predicated region fallthrough
CT: control target
= control target key end

     0   :  { %8 = vsyncpa [#allocation4], 0  ;;  %s192_s0 = inlined_call_operand.<no memory space> [shape: f32[1], index: 0, kind: input, shape index: {}]   ;;  %s193_s1 = inlined_call_operand.hbm [shape: f32[3,16,128], index: 1, kind: input, shape index: {}]   ;;  %s194_s2 = inlined_call_operand.hbm [shape: f32[3,16,128], index: 2, kind: output, shape index: {}]  }
   0x1   :  { %9 = vsyncpa [#allocation5], 0  ;;  %s140_s9 = smov [#allocation3]   ;;  %s92_s13 = scalar_lea.hbm %s193_s1, 768 }
   0x2   :  { %s17_s10 = sshll.u32 %s140_s9, 4  ;;  %p93_p0 = scmp.ne.s32.totalorder %s193_s1, %s92_s13  ;;  %s18_s10 = int_to_ptr.vmem [resolvable:$true] %s17_s10 }
   0x3   :  { %p96_p1 = scmp.lt.u32.totalorder %s92_s13, %s193_s1 }
   0x5   :  { %p98_p2 = pnand %p96_p1, %p93_p0 }
   0x7   :  { %101 = shalt.err (!%p98_p2)
}
   0x8   :  { %s102_s18 = scalar_lea.vmem %s18_s10, 768  ;;  %p107_p4 = scmp.lt.s32.totalorder %s18_s10, %s18_s10 }
   0x9   :  { %p103_p3 = scmp.ne.s32.totalorder %s18_s10, %s102_s18  ;;  %p108_p5 = scmp.lt.s32.totalorder %s102_s18, %s102_s18 }
   0xb   :  { %p109_p6 = por %p108_p5, %p107_p4 }
   0xd   :  { %p110_p7 = pnand %p109_p6, %p103_p3 }
   0xf   :  { %113 = shalt.err (!%p110_p7)
}
  0x10   :  { %s141_s19 = smov 128   ;;  %s142_s20 = smov 8  }
  0x11   :  { %23 = dma.hbm_to_vmem [thread:$0]  %s193_s1, 768, %s18_s10, [#allocation4], %s141_s19, %s141_s19, %s142_s20  }
  0x12   :  { %136 = dma.done.wait [#allocation4], 768  }
  0x13   :  { %137 = vsyncadd [#allocation4], 4294966528  ;;  %v27_v0 = vld [vmem:[#allocation3] sm:$0xff]  ;;  %v30_v1 = vld [vmem:[#allocation3 + $0x10] sm:$0xff]  ;;  %v50_v18 = vstv %s192_s0  ;;  %s143_s24 = smov [#allocation6]  }
  0x14   :  { %v33_v2 = vld [vmem:[#allocation3 + $0x20] sm:$0xff]  ;;  %v35_v3 = vmul.f32 %v27_v0, %v27_v0  ;;  %v37_v4 = vmul.f32 %v30_v1, %v30_v1  ;;  %v28_v6 = vld [vmem:[#allocation3 + $0x8] sm:$0xff]  ;;  %v31_v7 = vld [vmem:[#allocation3 + $0x18] sm:$0xff]  ;;  %s72_s25 = sshll.u32 %s143_s24, 4  ;;  %s73_s25 = int_to_ptr.vmem [resolvable:$true] %s72_s25 }
  0x15   :  { %v41_v5 = vmul.f32 %v33_v2, %v33_v2  ;;  %v34_v8 = vld [vmem:[#allocation3 + $0x28] sm:$0xff]  ;;  %v36_v9 = vmul.f32 %v28_v6, %v28_v6  ;;  %v38_v10 = vmul.f32 %v31_v7, %v31_v7  ;;  %s114_s0 = scalar_lea.vmem %s73_s25, 768  ;;  %p119_p9 = scmp.lt.s32.totalorder %s73_s25, %s73_s25 }
  0x16   :  { %v42_v11 = vmul.f32 %v34_v8, %v34_v8  ;;  %v39_v12 = vadd.f32 %v37_v4, %v35_v3  ;;  %p115_p8 = scmp.ne.s32.totalorder %s73_s25, %s114_s0  ;;  %p120_p10 = scmp.lt.s32.totalorder %s114_s0, %s114_s0 }
  0x17   :  { %v40_v13 = vadd.f32 %v38_v10, %v36_v9 }
  0x18   :  { %v43_v14 = vadd.f32 %v41_v5, %v39_v12  ;;  %p121_p11 = por %p120_p10, %p119_p9 }
  0x19   :  { %v44_v15 = vadd.f32 %v42_v11, %v40_v13 }
  0x1a   :  { %v45_v16 = vmax.f32 %v43_v14, 1e-16  ;;  %p122_p12 = pnand %p121_p11, %p115_p8 }
  0x1b   :  { %v46_v17 = vmax.f32 %v44_v15, 1e-16 }
  0x1c   :  { %88 = vrsqrt.f32 %v45_v16 }
  0x1d   :  { %90 = vrsqrt.f32 %v46_v17 }
  0x26   :  { %v89_v19 = vpop.eup %88 }
  0x27   :  { %v91_v20 = vpop.eup %90  ;;  %v51_v21 = vmul.f32 %v89_v19, %v50_v18 }
  0x28   :  { %v52_v22 = vmul.f32 %v91_v20, %v50_v18 }
  0x29   :  { %v53_v23 = vmul.f32 %v51_v21, %v27_v0  ;;  %v57_v24 = vmul.f32 %v51_v21, %v30_v1  ;;  %v62_v25 = vmul.f32 %v51_v21, %v33_v2 }
  0x2a   :  { %v54_v26 = vmul.f32 %v52_v22, %v28_v6  ;;  %v58_v27 = vmul.f32 %v52_v22, %v31_v7  ;;  %v63_v28 = vmul.f32 %v52_v22, %v34_v8 }
  0x2b   :  { %55 = vst [vmem:[#allocation6] sm:$0xff] %v53_v23  ;;  %60 = vst [vmem:[#allocation6 + $0x10] sm:$0xff] %v57_v24 }
  0x2c   :  { %65 = vst [vmem:[#allocation6 + $0x20] sm:$0xff] %v62_v25  ;;  %56 = vst [vmem:[#allocation6 + $0x8] sm:$0xff] %v54_v26 }
  0x2d   :  { %61 = vst [vmem:[#allocation6 + $0x18] sm:$0xff] %v58_v27  ;;  %66 = vst [vmem:[#allocation6 + $0x28] sm:$0xff] %v63_v28 }
  0x2e   :  { %125 = shalt.err (!%p122_p12)
}
  0x2f   :  { %s126_s28 = scalar_lea.hbm %s194_s2, 768 }
  0x30   :  { %p127_p13 = scmp.ne.s32.totalorder %s194_s2, %s126_s28  ;;  %p130_p0 = scmp.lt.u32.totalorder %s126_s28, %s194_s2 }
  0x32   :  { %p132_p1 = pnand %p130_p0, %p127_p13 }
  0x34   :  { %135 = shalt.err (!%p132_p1)
}
  0x35   :  { %78 = dma.vmem_to_hbm [thread:$0]  %s73_s25, 768, %s194_s2, [#allocation5], %s141_s19, %s141_s19, %s142_s20  }
  0x36   :  { %138 = dma.done.wait [#allocation5], 768  }
  0x37   :  { %139 = vsyncadd [#allocation5], 4294966528 }
  0x38   :  { %82 = vsyncpa [#allocation4], 1 }
  0x39   :  { %83 = vsyncpa [#allocation5], 1 }

</bundles_post_ra>
